<compile_context>
chip_gen: v7x
topology: tpu7x:2x2x1
jax: 0.10.0
libtpu: 0.0.40
codegen_flags: <defaults>
</compile_context>

<pallas_src>
import functools

import jax
import jax.numpy as jnp
from jax.experimental import pallas as pl
from jax.experimental.pallas import tpu as pltpu

F32 = jnp.float32
NEG = -1e30

# ----------------------------- config (deterministic, in-script) -----------------------------
PITCH_FEATURE_LEVEL = "phoneme_level"
ENERGY_FEATURE_LEVEL = "frame_level"
LEARN_ALIGNMENT = True
BIN_LOSS_ENABLE_STEPS = 0
BIN_LOSS_WARMUP_STEPS = 100
VAR_START_STEPS = 0
SIL_PH_IDS = (1,)
DUR_LOSS = "mse"
LAMBDA_PH_DUR = 1.0
LAMBDA_WORD_DUR = 1.0
LAMBDA_SENT_DUR = 1.0
BLANK_LOGPROB = -1.0
SUPCON_TEMPERATURE = 0.5
SUPCON_SCALE_BY_TEMPERATURE = True


# ----------------------------- small helpers -----------------------------
def _pick_tile_rows(n, max_tile=1024):
    """Full extent if small (always a legal block), else a multiple-of-8 row tile.

    Big tiles amortize the ~0.35us/step pipeline overhead (see tile-size sweep in the
    Pallas structure notes); the per-tile VMEM footprint here is well under the scoped limit.
    """
    if n <= max_tile:
        return n
    return max_tile - (max_tile % 8)


def _compiler_params(dim_sem, block_bytes):
    """CompilerParams sized from the chosen tiles (double-buffer + slack), v7x-safe cap."""
    need = 2 * int(block_bytes) + (4 << 20)
    limit = min(max(need, 16 << 20), 48 << 20)
    return pltpu.CompilerParams(dimension_semantics=dim_sem, vmem_limit_bytes=limit)


# ----------------------------- kernel 1: fused mel + postnet masked MAE -----------------------------
def _fused_mel_mae_kernel(mp_ref, pp_ref, mt_ref, mask_ref, out_ref,
                          acc_mel_ref, acc_post_ref, acc_cnt_ref,
                          *, total_rows, tile_rows):
    i = pl.program_id(0)

    @pl.when(i == 0)
    def _():
        acc_mel_ref[...] = jnp.zeros_like(acc_mel_ref)
        acc_post_ref[...] = jnp.zeros_like(acc_post_ref)
        acc_cnt_ref[...] = jnp.zeros_like(acc_cnt_ref)

    # In-kernel validity for the grid-padding rows of the last block.
    row = i * tile_rows + jax.lax.broadcasted_iota(jnp.int32, (tile_rows, 1), 0)
    inb = row < total_rows                              # (tile_rows, 1)
    m = jnp.where(inb, mask_ref[...], 0.0)              # (tile_rows, 1) frame mask
    sel = m > 0

    mt = mt_ref[...]
    # Pure VPU elementwise accumulation; cross-lane reduce only once, in the final step.
    acc_mel_ref[...] += jnp.where(sel, jnp.abs(mp_ref[...] - mt), 0.0)
    acc_post_ref[...] += jnp.where(sel, jnp.abs(pp_ref[...] - mt), 0.0)
    acc_cnt_ref[...] += m

    @pl.when(i == pl.num_programs(0) - 1)
    def _():
        out_ref[0] = jnp.sum(acc_mel_ref[...])
        out_ref[1] = jnp.sum(acc_post_ref[...])
        out_ref[2] = jnp.sum(acc_cnt_ref[...])


def fused_mel_mae(mel_pred, postnet_pred, mel_tgt, mel_mask_f):
    B, T_mel, n_mel = mel_tgt.shape
    R = B * T_mel
    mp = mel_pred.reshape(R, n_mel).astype(F32)
    pp = postnet_pred.reshape(R, n_mel).astype(F32)
    mt = mel_tgt.reshape(R, n_mel).astype(F32)
    mcol = mel_mask_f.reshape(R, 1).astype(F32)

    tile_r = _pick_tile_rows(R)
    grid = (pl.cdiv(R, tile_r),)
    block_bytes = tile_r * (3 * n_mel + 1) * 4 + tile_r * (2 * n_mel + 1) * 4

    out = pl.pallas_call(
        functools.partial(_fused_mel_mae_kernel, total_rows=R, tile_rows=tile_r),
        out_shape=jax.ShapeDtypeStruct((3,), F32),
        grid_spec=pltpu.PrefetchScalarGridSpec(
            num_scalar_prefetch=0,
            grid=grid,
            in_specs=[
                pl.BlockSpec((tile_r, n_mel), lambda i: (i, 0)),
                pl.BlockSpec((tile_r, n_mel), lambda i: (i, 0)),
                pl.BlockSpec((tile_r, n_mel), lambda i: (i, 0)),
                pl.BlockSpec((tile_r, 1), lambda i: (i, 0)),
            ],
            out_specs=pl.BlockSpec(memory_space=pltpu.MemorySpace.SMEM),
            scratch_shapes=[
                pltpu.VMEM((tile_r, n_mel), F32),
                pltpu.VMEM((tile_r, n_mel), F32),
                pltpu.VMEM((tile_r, 1), F32),
            ],
        ),
        compiler_params=_compiler_params(("arbitrary",), block_bytes),
    )(mp, pp, mt, mcol)

    cnt = jnp.maximum(out[2] * float(n_mel), 1.0)
    return out[0] / cnt, out[1] / cnt


# ----------------------------- kernel 2: BinLoss (row-tiled masked log-sum) -----------------------------
def _bin_loss_kernel(h_ref, s_ref, out_ref, acc_log_ref, acc_cnt_ref,
                     *, total_rows, tile_rows):
    i = pl.program_id(0)

    @pl.when(i == 0)
    def _():
        acc_log_ref[...] = jnp.zeros_like(acc_log_ref)
        acc_cnt_ref[...] = jnp.zeros_like(acc_cnt_ref)

    row = i * tile_rows + jax.lax.broadcasted_iota(jnp.int32, (tile_rows, 1), 0)
    inb = row < total_rows
    h = jnp.where(inb, h_ref[...], 0.0)
    logs = jnp.log(jnp.maximum(s_ref[...], 1e-12))
    acc_log_ref[...] += jnp.where(h > 0, logs, 0.0)
    acc_cnt_ref[...] += h

    @pl.when(i == pl.num_programs(0) - 1)
    def _():
        out_ref[0] = jnp.sum(acc_log_ref[...])
        out_ref[1] = jnp.sum(acc_cnt_ref[...])


def bin_loss_fn(hard, soft):
    B, _, T_mel, T_src = hard.shape
    R = B * T_mel
    h = hard.reshape(R, T_src).astype(F32)
    s = soft.reshape(R, T_src).astype(F32)

    tile_r = _pick_tile_rows(R)
    grid = (pl.cdiv(R, tile_r),)
    block_bytes = 4 * tile_r * T_src * 4

    out = pl.pallas_call(
        functools.partial(_bin_loss_kernel, total_rows=R, tile_rows=tile_r),
        out_shape=jax.ShapeDtypeStruct((2,), F32),
        grid_spec=pltpu.PrefetchScalarGridSpec(
            num_scalar_prefetch=0,
            grid=grid,
            in_specs=[
                pl.BlockSpec((tile_r, T_src), lambda i: (i, 0)),
                pl.BlockSpec((tile_r, T_src), lambda i: (i, 0)),
            ],
            out_specs=pl.BlockSpec(memory_space=pltpu.MemorySpace.SMEM),
            scratch_shapes=[
                pltpu.VMEM((tile_r, T_src), F32),
                pltpu.VMEM((tile_r, T_src), F32),
            ],
        ),
        compiler_params=_compiler_params(("arbitrary",), block_bytes),
    )(h, s)
    return -out[0] / jnp.maximum(out[1], 1.0)


# ----------------------------- kernel 3: masked log-softmax (per-batch class mask) -----------------------------
def _masked_log_softmax_kernel(x_ref, m_ref, o_ref):
    x = x_ref[0]                         # (tile_t, Cp)
    valid = m_ref[0] > 0                 # (1, Cp) -> broadcasts over rows
    xm = jnp.where(valid, x, NEG)
    xmax = jnp.max(xm, axis=-1, keepdims=True)
    e = jnp.where(valid, jnp.exp(xm - xmax), 0.0)
    lse = xmax + jnp.log(jnp.sum(e, axis=-1, keepdims=True))
    o_ref[0] = jnp.where(valid, xm - lse, NEG)


def masked_log_softmax_3d(x, class_valid):
    """x: [B, T, Cp] f32; class_valid: [B, 1, Cp] (1 = valid class). Returns [B, T, Cp]."""
    B, T, Cp = x.shape
    tile_t = _pick_tile_rows(T, max_tile=256)
    grid = (B, pl.cdiv(T, tile_t))
    block_bytes = (2 * tile_t * Cp + Cp) * 4
    return pl.pallas_call(
        _masked_log_softmax_kernel,
        out_shape=jax.ShapeDtypeStruct((B, T, Cp), F32),
        grid_spec=pltpu.PrefetchScalarGridSpec(
            num_scalar_prefetch=0,
            grid=grid,
            in_specs=[
                pl.BlockSpec((1, tile_t, Cp), lambda b, t: (b, t, 0)),
                pl.BlockSpec((1, 1, Cp), lambda b, t: (b, 0, 0)),
            ],
            out_specs=pl.BlockSpec((1, tile_t, Cp), lambda b, t: (b, t, 0)),
        ),
        # every (b, t) block is independent -> "parallel" so v7x megacore can shard it
        compiler_params=_compiler_params(("parallel", "parallel"), block_bytes),
    )(x.astype(F32), class_valid.astype(F32))


# ----------------------------- CTC ForwardSum loss -----------------------------
# TODO(synk): the CTC forward DP recursion is sequential & data-dependent; kept in jax.lax.scan
# (only the masked log-softmax hot path runs inside a Pallas kernel).
def _ctc_single(log_probs, query_len, key_len, *, num_classes):
    # log_probs: [T_max, Cp] masked log-softmax (invalid classes ~ NEG); targets are 1..key_len.
    T_max = log_probs.shape[0]
    S_max = 2 * (num_classes - 1) + 1
    j = jnp.arange(S_max)
    labels = jnp.where(j % 2 == 0, 0, (j + 1) // 2)   # blank, 1, blank, 2, ...
    S = 2 * key_len + 1
    valid_pos = j < S

    lp0 = log_probs[0]
    alpha0 = jnp.full((S_max,), NEG, F32)
    alpha0 = alpha0.at[0].set(lp0[0])
    alpha0 = alpha0.at[1].set(lp0[1])
    alpha0 = jnp.where(valid_pos, alpha0, NEG)

    def step(alpha, xs):
        lp_t, t = xs
        s1 = jnp.concatenate([jnp.full((1,), NEG, F32), alpha[:-1]])
        s2 = jnp.concatenate([jnp.full((2,), NEG, F32), alpha[:-2]])
        s2 = jnp.where(labels != 0, s2, NEG)          # targets are all distinct -> skip allowed
        m = jnp.maximum(jnp.maximum(alpha, s1), s2)
        lse = m + jnp.log(jnp.exp(alpha - m) + jnp.exp(s1 - m) + jnp.exp(s2 - m))
        lse = jnp.where(m <= NEG * 0.5, NEG, lse)     # all-NEG rows stay ~NEG, no NaN
        new_alpha = lse + lp_t[labels]
        new_alpha = jnp.where(valid_pos, new_alpha, NEG)
        new_alpha = jnp.where(t < query_len, new_alpha, alpha)   # freeze past query_len
        return new_alpha, None

    ts = jnp.arange(1, T_max)
    alpha_T, _ = jax.lax.scan(step, alpha0, (log_probs[1:], ts))
    a1 = alpha_T[S - 1]
    a2 = alpha_T[S - 2]
    m = jnp.maximum(a1, a2)
    ll = m + jnp.log(jnp.exp(a1 - m) + jnp.exp(a2 - m))
    nll = -ll
    nll = jnp.where(jnp.isfinite(nll) & (nll < 1e29), nll, 0.0)   # zero_infinity=True
    return nll / jnp.maximum(key_len.astype(F32), 1.0)            # CTCLoss reduction='mean', batch 1


def forward_sum_loss(attn_logprob, in_lens, out_lens, blank_logprob=BLANK_LOGPROB):
    B, _, T_mel, T_src = attn_logprob.shape
    C = T_src + 1
    Cp = ((C + 127) // 128) * 128                       # lane-dense class dim (padded cols masked)
    x = jnp.pad(attn_logprob[:, 0], ((0, 0), (0, 0), (1, Cp - C)),
                constant_values=blank_logprob)          # [B, T_mel, Cp]
    class_valid = (jnp.arange(Cp)[None, :] <= in_lens[:, None]).astype(F32)   # c in [0, key_len]
    logp = masked_log_softmax_3d(x, class_valid[:, None, :])    # [B, T_mel, Cp]
    losses = jax.vmap(functools.partial(_ctc_single, num_classes=C))(logp, out_lens, in_lens)
    return jnp.mean(losses)


# ----------------------------- tiny reductions: plain JAX (XLA fuses them) -----------------------------
def masked_mse(pred, tgt, mask_f):
    d = (pred.astype(F32) - tgt.astype(F32)) * mask_f
    return jnp.sum(d * d) / jnp.maximum(jnp.sum(mask_f), 1.0)


def sup_con_loss(features, labels, temperature=SUPCON_TEMPERATURE,
                 scale_by_temperature=SUPCON_SCALE_BY_TEMPERATURE):
    f = features.astype(F32)
    f = f / jnp.maximum(jnp.sqrt(jnp.sum(f * f, axis=1, keepdims=True)), 1e-12)
    B = f.shape[0]
    adc = (f @ f.T) / temperature
    logits = adc - jax.lax.stop_gradient(jnp.max(adc, axis=1, keepdims=True))
    exp_logits = jnp.exp(logits)
    mask = (labels[:, None] == labels[None, :]).astype(F32)
    eye = jnp.eye(B, dtype=F32)
    pos = mask * (1.0 - eye)
    neg = 1.0 - mask
    denom = (jnp.sum(exp_logits * neg, axis=1, keepdims=True)
             + jnp.sum(exp_logits * pos, axis=1, keepdims=True))
    logp = logits - jnp.log(denom)
    num_pos = jnp.sum(pos, axis=1)
    row_sum = jnp.sum(logp * pos, axis=1)
    valid = num_pos > 0
    per_row = jnp.where(valid, row_sum / jnp.where(valid, num_pos, 1.0), 0.0)
    loss = -jnp.sum(per_row) / jnp.maximum(jnp.sum(valid.astype(F32)), 1.0)
    if scale_by_temperature:
        loss = loss * temperature
    return loss


def get_duration_loss(dur_pred_log, dur_gt_raw, txt_tokens, src_mask_f):
    B, T = txt_tokens.shape
    nonpadding = src_mask_f
    dur_gt = dur_gt_raw.astype(F32) * nonpadding
    is_sil = jnp.zeros_like(txt_tokens, dtype=bool)
    for p_id in SIL_PH_IDS:
        is_sil = is_sil | (txt_tokens == p_id)
    is_sil = is_sil.astype(F32)

    losses = {}
    # pdur: masked MSE of log-duration prediction vs log(dur_gt + 1)
    pdur_num = jnp.sum(((dur_pred_log.astype(F32) - jnp.log(dur_gt + 1.0)) ** 2) * nonpadding)
    losses["pdur"] = pdur_num / jnp.maximum(jnp.sum(nonpadding), 1.0) * LAMBDA_PH_DUR
    dur_pred = jnp.maximum(jnp.exp(dur_pred_log.astype(F32)) - 1.0, 0.0)

    # wdur: word-level durations via segment-sum (scatter_add done with one-hot einsum)
    word_id = (jnp.cumsum(is_sil, axis=-1) * (1.0 - is_sil)).astype(jnp.int32)   # [B, T]
    W = T + 1
    onehot = jax.nn.one_hot(word_id, W, dtype=F32)                               # [B, T, W]
    word_dur_p = jnp.einsum("btw,bt->bw", onehot, dur_pred)[:, 1:]
    word_dur_g = jnp.einsum("btw,bt->bw", onehot, dur_gt)[:, 1:]
    word_np = (word_dur_g > 0).astype(F32)
    wnum = jnp.sum(((jnp.log(word_dur_p + 1.0) - jnp.log(word_dur_g + 1.0)) ** 2) * word_np)
    losses["wdur"] = wnum / jnp.maximum(jnp.sum(word_np), 1.0) * LAMBDA_WORD_DUR

    # sdur: sentence-level durations
    sent_p = jnp.sum(dur_pred, axis=-1)
    sent_g = jnp.sum(dur_gt, axis=-1)
    losses["sdur"] = jnp.mean((jnp.log(sent_p + 1.0) - jnp.log(sent_g + 1.0)) ** 2) * LAMBDA_SENT_DUR
    return losses


# ----------------------------- full CompTransTTSLoss forward -----------------------------
def _comp_trans_tts_loss_impl(
    texts, mel_targets, pitch_targets, energy_targets,
    mel_predictions, postnet_mel_predictions, pitch_predictions, energy_predictions,
    log_duration_predictions, src_masks_pad, mel_masks_pad, src_lens, mel_lens,
    attn_soft, attn_hard, attn_hard_dur, attn_logprob,
    style, current_style, intensities, intensity_embedding, emotions, emotion_embedding,
    step,
):
    # NOTE: `step` is static (Python int), matching the module's Python-level branches;
    # the bin-loss warmup weight is computed traced-safe anyway.
    src_masks = ~src_masks_pad          # True = valid (module inverts the pad mask)
    mel_masks = ~mel_masks_pad
    src_mask_f = src_masks.astype(F32)
    mel_mask_f = mel_masks.astype(F32)

    duration_targets = attn_hard_dur if LEARN_ALIGNMENT else None

    # ---- fused mel / postnet MAE over masked frames (single Pallas kernel) ----
    mel_loss, postnet_mel_loss = fused_mel_mae(
        mel_predictions, postnet_mel_predictions, mel_targets, mel_mask_f)

    # ---- alignment losses ----
    ctc_loss = jnp.zeros((), F32)
    bin_loss = jnp.zeros((), F32)
    if LEARN_ALIGNMENT:
        ctc_loss = forward_sum_loss(attn_logprob, src_lens, mel_lens)
        step_f = jnp.asarray(step, F32)
        bin_loss_weight = jnp.where(
            step_f < BIN_LOSS_ENABLE_STEPS, 0.0,
            jnp.minimum((step_f - BIN_LOSS_ENABLE_STEPS) / BIN_LOSS_WARMUP_STEPS, 1.0))
        bin_loss = bin_loss_fn(attn_hard, attn_soft) * bin_loss_weight

    # ---- style / supcon losses (tiny -> plain JAX, XLA fuses them) ----
    if style is not None and current_style is not None:
        style_loss = jnp.mean((style.astype(F32) - current_style.astype(F32)) ** 2)
        emotion_loss = sup_con_loss(emotion_embedding[:, 0, :], emotions)
        intensity_loss = sup_con_loss(intensity_embedding[:, 0, :], intensities)
    else:
        style_loss = jnp.zeros((), F32)
        emotion_loss = jnp.zeros((), F32)
        intensity_loss = jnp.zeros((), F32)

    total_loss = (mel_loss + postnet_mel_loss + ctc_loss + bin_loss
                  + style_loss + intensity_loss + emotion_loss)

    pitch_loss = jnp.zeros((), F32)
    energy_loss = jnp.zeros((), F32)
    duration_loss = {"pdur": jnp.zeros((), F32), "wdur": jnp.zeros((), F32),
                     "sdur": jnp.zeros((), F32)}
    if step >= VAR_START_STEPS:
        pm = src_mask_f if PITCH_FEATURE_LEVEL == "phoneme_level" else mel_mask_f
        pitch_loss = masked_mse(pitch_predictions, pitch_targets, pm)
        em = src_mask_f if ENERGY_FEATURE_LEVEL == "phoneme_level" else mel_mask_f
        energy_loss = masked_mse(energy_predictions, energy_targets, em)
        duration_loss = get_duration_loss(log_duration_predictions, duration_targets,
                                          texts, src_mask_f)
        total_loss = total_loss + sum(duration_loss.values()) + pitch_loss + energy_loss

    return (total_loss, mel_loss, postnet_mel_loss, pitch_loss, energy_loss,
            duration_loss, ctc_loss, bin_loss, style_loss, intensity_loss, emotion_loss)


# jit the whole composite loss: amortizes dispatch and lets XLA fuse the small reductions
# around the three Pallas custom calls. `step` stays static (Python-level branching).
comp_trans_tts_loss = jax.jit(_comp_trans_tts_loss_impl, static_argnames=("step",))


# ----------------------------- demo -----------------------------
if __name__ == "__main__":
    key = jax.random.PRNGKey(0)
    ks = jax.random.split(key, 16)
    B, T_src, T_mel, n_mel, D_style, D_emb = 2, 8, 16, 16, 32, 32

    src_lens = jnp.array([8, 6], jnp.int32)
    mel_lens = jnp.array([16, 12], jnp.int32)
    src_masks_pad = jnp.arange(T_src)[None, :] >= src_lens[:, None]    # True = padding
    mel_masks_pad = jnp.arange(T_mel)[None, :] >= mel_lens[:, None]

    texts = jnp.array([[1, 5, 6, 1, 7, 8, 1, 9],
                       [1, 4, 5, 1, 6, 7, 0, 0]], jnp.int32)

    mel_targets = jax.random.normal(ks[0], (B, T_mel, n_mel), F32)
    mel_predictions = jax.random.normal(ks[1], (B, T_mel, n_mel), F32)
    postnet_mel_predictions = jax.random.normal(ks[2], (B, T_mel, n_mel), F32)
    pitch_targets = jax.random.normal(ks[3], (B, T_src), F32)
    pitch_predictions = jax.random.normal(ks[4], (B, T_src), F32)
    energy_targets = jax.random.normal(ks[5], (B, T_mel), F32)
    energy_predictions = jax.random.normal(ks[6], (B, T_mel), F32)
    log_duration_predictions = jax.random.normal(ks[7], (B, T_src), F32) * 0.1
    attn_logprob = jax.random.normal(ks[8], (B, 1, T_mel, T_src), F32)
    attn_soft = jax.nn.softmax(jax.random.normal(ks[9], (B, 1, T_mel, T_src), F32), axis=-1)

    # monotonic hard alignment (each valid frame assigned to one phoneme)
    frame_idx = jnp.arange(T_mel)[None, :]
    phon = jnp.minimum((frame_idx * src_lens[:, None]) // mel_lens[:, None],
                       src_lens[:, None] - 1)
    hard = jax.nn.one_hot(phon, T_src, dtype=F32) * (~mel_masks_pad).astype(F32)[:, :, None]
    attn_hard = hard[:, None]                     # [B, 1, T_mel, T_src]
    attn_hard_dur = jnp.sum(hard, axis=1)         # [B, T_src]

    style = jax.random.normal(ks[10], (B, D_style), F32)
    current_style = jax.random.normal(ks[11], (B, D_style), F32)
    emotions = jnp.array([3, 3], jnp.int32)
    intensities = jnp.array([1, 1], jnp.int32)
    emotion_embedding = jax.random.normal(ks[12], (B, 1, D_emb), F32)
    intensity_embedding = jax.random.normal(ks[13], (B, 1, D_emb), F32)

    step = 1000

    out = comp_trans_tts_loss(
        texts, mel_targets, pitch_targets, energy_targets,
        mel_predictions, postnet_mel_predictions, pitch_predictions, energy_predictions,
        log_duration_predictions, src_masks_pad, mel_masks_pad, src_lens, mel_lens,
        attn_soft, attn_hard, attn_hard_dur, attn_logprob,
        style, current_style, intensities, intensity_embedding, emotions, emotion_embedding,
        step=step,
    )
    jax.tree_util.tree_map(jax.block_until_ready, out)
    print("KERNEL_OK")
</pallas_src>

<mosaic_0001>
module attributes {stable_mosaic.version = 11 : i64} {
  func.func @_masked_log_softmax_kernel(%arg0: i32, %arg1: i32, %arg2: memref<1x16x128xf32, #tpu.memory_space<vmem>>, %arg3: memref<1x1x128xf32, #tpu.memory_space<vmem>>, %arg4: memref<1x16x128xf32, #tpu.memory_space<vmem>>) attributes {dimension_semantics = [#tpu.dimension_semantics<parallel>, #tpu.dimension_semantics<parallel>], iteration_bounds = array<i64: 2, 1>, scalar_prefetch = 0 : i64, scratch_operands = 0 : i64, tpu.core_type = #tpu.core_type<tc>, window_params = [{transform_indices = @transform_0, window_bounds = array<i64: 1, 16, 128>}, {transform_indices = @transform_1, window_bounds = array<i64: 1, 1, 128>}, {transform_indices = @transform_2, window_bounds = array<i64: 1, 16, 128>}]} {
    %c0 = arith.constant 0 : index
    %c0_0 = arith.constant 0 : index
    %c0_1 = arith.constant 0 : index
    %0 = vector.load %arg2[%c0, %c0_0, %c0_1] : memref<1x16x128xf32, #tpu.memory_space<vmem>>, vector<1x16x128xf32>
    %1 = vector.shape_cast %0 : vector<1x16x128xf32> to vector<16x128xf32>
    %c0_2 = arith.constant 0 : index
    %c0_3 = arith.constant 0 : index
    %c0_4 = arith.constant 0 : index
    %2 = vector.load %arg3[%c0_2, %c0_3, %c0_4] : memref<1x1x128xf32, #tpu.memory_space<vmem>>, vector<1x1x128xf32>
    %3 = vector.shape_cast %2 : vector<1x1x128xf32> to vector<1x128xf32>
    %cst = arith.constant 0.000000e+00 : f32
    %4 = vector.broadcast %cst : f32 to vector<1x128xf32>
    %5 = arith.cmpf ogt, %3, %4 : vector<1x128xf32>
    %cst_5 = arith.constant -1.000000e+30 : f32
    %6 = vector.shape_cast %5 : vector<1x128xi1> to vector<1x128xi1>
    %7 = vector.broadcast %6 : vector<1x128xi1> to vector<16x128xi1>
    %8 = vector.broadcast %cst_5 : f32 to vector<16x128xf32>
    %9 = arith.select %7, %1, %8 : vector<16x128xi1>, vector<16x128xf32>
    %cst_6 = arith.constant dense<0xFF800000> : vector<16xf32>
    %10 = vector.multi_reduction <maximumf>, %9, %cst_6 [1] : vector<16x128xf32> to vector<16xf32>
    %11 = vector.shape_cast %10 : vector<16xf32> to vector<16x1xf32>
    %12 = vector.broadcast %11 : vector<16x1xf32> to vector<16x128xf32>
    %13 = arith.subf %9, %12 : vector<16x128xf32>
    %14 = math.exp %13 : vector<16x128xf32>
    %cst_7 = arith.constant 0.000000e+00 : f32
    %15 = vector.shape_cast %5 : vector<1x128xi1> to vector<1x128xi1>
    %16 = vector.broadcast %15 : vector<1x128xi1> to vector<16x128xi1>
    %17 = vector.broadcast %cst_7 : f32 to vector<16x128xf32>
    %18 = arith.select %16, %14, %17 : vector<16x128xi1>, vector<16x128xf32>
    %cst_8 = arith.constant dense<0.000000e+00> : vector<16xf32>
    %19 = vector.multi_reduction <add>, %18, %cst_8 [1] : vector<16x128xf32> to vector<16xf32>
    %20 = vector.shape_cast %19 : vector<16xf32> to vector<16x1xf32>
    %21 = math.log %20 : vector<16x1xf32>
    %22 = arith.addf %11, %21 : vector<16x1xf32>
    %23 = vector.broadcast %22 : vector<16x1xf32> to vector<16x128xf32>
    %24 = arith.subf %9, %23 : vector<16x128xf32>
    %cst_9 = arith.constant -1.000000e+30 : f32
    %25 = vector.shape_cast %5 : vector<1x128xi1> to vector<1x128xi1>
    %26 = vector.broadcast %25 : vector<1x128xi1> to vector<16x128xi1>
    %27 = vector.broadcast %cst_9 : f32 to vector<16x128xf32>
    %28 = arith.select %26, %24, %27 : vector<16x128xi1>, vector<16x128xf32>
    %c0_10 = arith.constant 0 : index
    %c0_11 = arith.constant 0 : index
    %c0_12 = arith.constant 0 : index
    %29 = vector.load %arg4[%c0_10, %c0_11, %c0_12] : memref<1x16x128xf32, #tpu.memory_space<vmem>>, vector<1x16x128xf32>
    %30 = vector.shape_cast %29 : vector<1x16x128xf32> to vector<16x128xf32>
    %31 = vector.shape_cast %28 : vector<16x128xf32> to vector<1x16x128xf32>
    tpu.vector_store %arg4[%c0_10, %c0_11, %c0_12], %31 {strides = array<i32>} : memref<1x16x128xf32, #tpu.memory_space<vmem>>, vector<1x16x128xf32>,
    return
  }
  func.func @transform_0(%arg0: i32, %arg1: i32) -> (i32, i32, i32) {
    %c0_i32 = arith.constant 0 : i32
    %c0_i32_0 = arith.constant 0 : i32
    return %arg0, %arg1, %c0_i32 : i32, i32, i32
  }
  func.func @transform_1(%arg0: i32, %arg1: i32) -> (i32, i32, i32) {
    %c0_i32 = arith.constant 0 : i32
    %c0_i32_0 = arith.constant 0 : i32
    %c0_i32_1 = arith.constant 0 : i32
    return %arg0, %c0_i32, %c0_i32_0 : i32, i32, i32
  }
  func.func @transform_2(%arg0: i32, %arg1: i32) -> (i32, i32, i32) {
    %c0_i32 = arith.constant 0 : i32
    %c0_i32_0 = arith.constant 0 : i32
    return %arg0, %arg1, %c0_i32 : i32, i32, i32
  }
}

module attributes {stable_mosaic.version = 11 : i64} {
  func.func @_bin_loss_kernel(%arg0: i32, %arg1: memref<32x8xf32, #tpu.memory_space<vmem>>, %arg2: memref<32x8xf32, #tpu.memory_space<vmem>>, %arg3: memref<2xf32, #tpu.memory_space<smem>>, %arg4: memref<32x8xf32, #tpu.memory_space<vmem>>, %arg5: memref<32x8xf32, #tpu.memory_space<vmem>>) attributes {dimension_semantics = [#tpu.dimension_semantics<arbitrary>], iteration_bounds = array<i64: 1>, scalar_prefetch = 0 : i64, scratch_operands = 2 : i64, tpu.core_type = #tpu.core_type<tc>, window_params = [{transform_indices = @transform_0, window_bounds = array<i64: 32, 8>}, {transform_indices = @transform_1, window_bounds = array<i64: 32, 8>}, {transform_indices = @transform_2, window_bounds = array<i64: 2>}]} {
    %c0_i32 = arith.constant 0 : i32
    %0 = arith.cmpi eq, %arg0, %c0_i32 : i32
    %1 = arith.extui %0 : i1 to i32
    %c0_i32_0 = arith.constant 0 : i32
    %2 = arith.cmpi ne, %1, %c0_i32_0 : i32
    scf.if %2 {
      %cst_18 = arith.constant 0.000000e+00 : f32
      %31 = vector.broadcast %cst_18 : f32 to vector<32x8xf32>
      %c0_19 = arith.constant 0 : index
      %c0_20 = arith.constant 0 : index
      %32 = vector.load %arg4[%c0_19, %c0_20] : memref<32x8xf32, #tpu.memory_space<vmem>>, vector<32x8xf32>
      tpu.vector_store %arg4[%c0_19, %c0_20], %31 {strides = array<i32>} : memref<32x8xf32, #tpu.memory_space<vmem>>, vector<32x8xf32>,
      %cst_21 = arith.constant 0.000000e+00 : f32
      %33 = vector.broadcast %cst_21 : f32 to vector<32x8xf32>
      %c0_22 = arith.constant 0 : index
      %c0_23 = arith.constant 0 : index
      %34 = vector.load %arg5[%c0_22, %c0_23] : memref<32x8xf32, #tpu.memory_space<vmem>>, vector<32x8xf32>
      tpu.vector_store %arg5[%c0_22, %c0_23], %33 {strides = array<i32>} : memref<32x8xf32, #tpu.memory_space<vmem>>, vector<32x8xf32>,
    } else {
    }
    %c32_i32 = arith.constant 32 : i32
    %3 = arith.muli %arg0, %c32_i32 : i32
    %4 = tpu.iota {dimensions = array<i32: 0>} : vector<32x1xi32>
    %5 = vector.broadcast %3 : i32 to vector<32x1xi32>
    %6 = arith.addi %5, %4 : vector<32x1xi32>
    %c32_i32_1 = arith.constant 32 : i32
    %7 = vector.broadcast %c32_i32_1 : i32 to vector<32x1xi32>
    %8 = arith.cmpi slt, %6, %7 : vector<32x1xi32>
    %c0 = arith.constant 0 : index
    %c0_2 = arith.constant 0 : index
    %9 = vector.load %arg1[%c0, %c0_2] : memref<32x8xf32, #tpu.memory_space<vmem>>, vector<32x8xf32>
    %cst = arith.constant 0.000000e+00 : f32
    %10 = vector.shape_cast %8 : vector<32x1xi1> to vector<32x1xi1>
    %11 = vector.broadcast %10 : vector<32x1xi1> to vector<32x8xi1>
    %12 = vector.broadcast %cst : f32 to vector<32x8xf32>
    %13 = arith.select %11, %9, %12 : vector<32x8xi1>, vector<32x8xf32>
    %c0_3 = arith.constant 0 : index
    %c0_4 = arith.constant 0 : index
    %14 = vector.load %arg2[%c0_3, %c0_4] : memref<32x8xf32, #tpu.memory_space<vmem>>, vector<32x8xf32>
    %cst_5 = arith.constant 9.99999996E-13 : f32
    %15 = vector.broadcast %cst_5 : f32 to vector<32x8xf32>
    %16 = arith.maximumf %14, %15 : vector<32x8xf32>
    %17 = math.log %16 : vector<32x8xf32>
    %c0_6 = arith.constant 0 : index
    %c0_7 = arith.constant 0 : index
    %18 = vector.load %arg4[%c0_6, %c0_7] : memref<32x8xf32, #tpu.memory_space<vmem>>, vector<32x8xf32>
    %cst_8 = arith.constant 0.000000e+00 : f32
    %19 = vector.broadcast %cst_8 : f32 to vector<32x8xf32>
    %20 = arith.cmpf ogt, %13, %19 : vector<32x8xf32>
    %cst_9 = arith.constant 0.000000e+00 : f32
    %21 = vector.broadcast %cst_9 : f32 to vector<32x8xf32>
    %22 = arith.select %20, %17, %21 : vector<32x8xi1>, vector<32x8xf32>
    %23 = arith.addf %18, %22 : vector<32x8xf32>
    %c0_10 = arith.constant 0 : index
    %c0_11 = arith.constant 0 : index
    %24 = vector.load %arg4[%c0_10, %c0_11] : memref<32x8xf32, #tpu.memory_space<vmem>>, vector<32x8xf32>
    tpu.vector_store %arg4[%c0_10, %c0_11], %23 {strides = array<i32>} : memref<32x8xf32, #tpu.memory_space<vmem>>, vector<32x8xf32>,
    %c0_12 = arith.constant 0 : index
    %c0_13 = arith.constant 0 : index
    %25 = vector.load %arg5[%c0_12, %c0_13] : memref<32x8xf32, #tpu.memory_space<vmem>>, vector<32x8xf32>
    %26 = arith.addf %25, %13 : vector<32x8xf32>
    %c0_14 = arith.constant 0 : index
    %c0_15 = arith.constant 0 : index
    %27 = vector.load %arg5[%c0_14, %c0_15] : memref<32x8xf32, #tpu.memory_space<vmem>>, vector<32x8xf32>
    tpu.vector_store %arg5[%c0_14, %c0_15], %26 {strides = array<i32>} : memref<32x8xf32, #tpu.memory_space<vmem>>, vector<32x8xf32>,
    %c0_i32_16 = arith.constant 0 : i32
    %28 = arith.cmpi eq, %arg0, %c0_i32_16 : i32
    %29 = arith.extui %28 : i1 to i32
    %c0_i32_17 = arith.constant 0 : i32
    %30 = arith.cmpi ne, %29, %c0_i32_17 : i32
    scf.if %30 {
      %c0_18 = arith.constant 0 : index
      %c0_19 = arith.constant 0 : index
      %31 = vector.load %arg4[%c0_18, %c0_19] : memref<32x8xf32, #tpu.memory_space<vmem>>, vector<32x8xf32>
      %32 = vector.shape_cast %31 : vector<32x8xf32> to vector<1x32x8xf32>
      %cst_20 = arith.constant dense<0.000000e+00> : vector<1xf32>
      %33 = vector.multi_reduction <add>, %32, %cst_20 [1, 2] : vector<1x32x8xf32> to vector<1xf32>
      %34 = vector.shape_cast %33 : vector<1xf32> to vector<1x1x1xf32>
      %35 = vector.extract %34[0, 0, 0] : f32 from vector<1x1x1xf32>
      %c0_21 = arith.constant 0 : index
      %36 = memref.load %arg3[%c0_21] : memref<2xf32, #tpu.memory_space<smem>>
      memref.store %35, %arg3[%c0_21] : memref<2xf32, #tpu.memory_space<smem>>
      %c0_22 = arith.constant 0 : index
      %c0_23 = arith.constant 0 : index
      %37 = vector.load %arg5[%c0_22, %c0_23] : memref<32x8xf32, #tpu.memory_space<vmem>>, vector<32x8xf32>
      %38 = vector.shape_cast %37 : vector<32x8xf32> to vector<1x32x8xf32>
      %cst_24 = arith.constant dense<0.000000e+00> : vector<1xf32>
      %39 = vector.multi_reduction <add>, %38, %cst_24 [1, 2] : vector<1x32x8xf32> to vector<1xf32>
      %40 = vector.shape_cast %39 : vector<1xf32> to vector<1x1x1xf32>
      %41 = vector.extract %40[0, 0, 0] : f32 from vector<1x1x1xf32>
      %c1 = arith.constant 1 : index
      %42 = memref.load %arg3[%c1] : memref<2xf32, #tpu.memory_space<smem>>
      memref.store %41, %arg3[%c1] : memref<2xf32, #tpu.memory_space<smem>>
    } else {
    }
    return
  }
  func.func @transform_0(%arg0: i32) -> (i32, i32) {
    %c0_i32 = arith.constant 0 : i32
    %c0_i32_0 = arith.constant 0 : i32
    return %arg0, %c0_i32 : i32, i32
  }
  func.func @transform_1(%arg0: i32) -> (i32, i32) {
    %c0_i32 = arith.constant 0 : i32
    %c0_i32_0 = arith.constant 0 : i32
    return %arg0, %c0_i32 : i32, i32
  }
  func.func @transform_2(%arg0: i32) -> i32 {
    %c0_i32 = arith.constant 0 : i32
    %c0_i32_0 = arith.constant 0 : i32
    return %c0_i32 : i32
  }
}

module attributes {stable_mosaic.version = 11 : i64} {
  func.func @_fused_mel_mae_kernel(%arg0: i32, %arg1: memref<32x16xf32, #tpu.memory_space<vmem>>, %arg2: memref<32x16xf32, #tpu.memory_space<vmem>>, %arg3: memref<32x16xf32, #tpu.memory_space<vmem>>, %arg4: memref<32x1xf32, #tpu.memory_space<vmem>>, %arg5: memref<3xf32, #tpu.memory_space<smem>>, %arg6: memref<32x16xf32, #tpu.memory_space<vmem>>, %arg7: memref<32x16xf32, #tpu.memory_space<vmem>>, %arg8: memref<32x1xf32, #tpu.memory_space<vmem>>) attributes {dimension_semantics = [#tpu.dimension_semantics<arbitrary>], iteration_bounds = array<i64: 1>, scalar_prefetch = 0 : i64, scratch_operands = 3 : i64, tpu.core_type = #tpu.core_type<tc>, window_params = [{transform_indices = @transform_0, window_bounds = array<i64: 32, 16>}, {transform_indices = @transform_1, window_bounds = array<i64: 32, 16>}, {transform_indices = @transform_2, window_bounds = array<i64: 32, 16>}, {transform_indices = @transform_3, window_bounds = array<i64: 32, 1>}, {transform_indices = @transform_4, window_bounds = array<i64: 3>}]} {
    %c0_i32 = arith.constant 0 : i32
    %0 = arith.cmpi eq, %arg0, %c0_i32 : i32
    %1 = arith.extui %0 : i1 to i32
    %c0_i32_0 = arith.constant 0 : i32
    %2 = arith.cmpi ne, %1, %c0_i32_0 : i32
    scf.if %2 {
      %cst_26 = arith.constant 0.000000e+00 : f32
      %41 = vector.broadcast %cst_26 : f32 to vector<32x16xf32>
      %c0_27 = arith.constant 0 : index
      %c0_28 = arith.constant 0 : index
      %42 = vector.load %arg6[%c0_27, %c0_28] : memref<32x16xf32, #tpu.memory_space<vmem>>, vector<32x16xf32>
      tpu.vector_store %arg6[%c0_27, %c0_28], %41 {strides = array<i32>} : memref<32x16xf32, #tpu.memory_space<vmem>>, vector<32x16xf32>,
      %cst_29 = arith.constant 0.000000e+00 : f32
      %43 = vector.broadcast %cst_29 : f32 to vector<32x16xf32>
      %c0_30 = arith.constant 0 : index
      %c0_31 = arith.constant 0 : index
      %44 = vector.load %arg7[%c0_30, %c0_31] : memref<32x16xf32, #tpu.memory_space<vmem>>, vector<32x16xf32>
      tpu.vector_store %arg7[%c0_30, %c0_31], %43 {strides = array<i32>} : memref<32x16xf32, #tpu.memory_space<vmem>>, vector<32x16xf32>,
      %cst_32 = arith.constant 0.000000e+00 : f32
      %45 = vector.broadcast %cst_32 : f32 to vector<32x1xf32>
      %c0_33 = arith.constant 0 : index
      %c0_34 = arith.constant 0 : index
      %46 = vector.load %arg8[%c0_33, %c0_34] : memref<32x1xf32, #tpu.memory_space<vmem>>, vector<32x1xf32>
      tpu.vector_store %arg8[%c0_33, %c0_34], %45 {strides = array<i32>} : memref<32x1xf32, #tpu.memory_space<vmem>>, vector<32x1xf32>,
    } else {
    }
    %c32_i32 = arith.constant 32 : i32
    %3 = arith.muli %arg0, %c32_i32 : i32
    %4 = tpu.iota {dimensions = array<i32: 0>} : vector<32x1xi32>
    %5 = vector.broadcast %3 : i32 to vector<32x1xi32>
    %6 = arith.addi %5, %4 : vector<32x1xi32>
    %c32_i32_1 = arith.constant 32 : i32
    %7 = vector.broadcast %c32_i32_1 : i32 to vector<32x1xi32>
    %8 = arith.cmpi slt, %6, %7 : vector<32x1xi32>
    %c0 = arith.constant 0 : index
    %c0_2 = arith.constant 0 : index
    %9 = vector.load %arg4[%c0, %c0_2] : memref<32x1xf32, #tpu.memory_space<vmem>>, vector<32x1xf32>
    %cst = arith.constant 0.000000e+00 : f32
    %10 = vector.broadcast %cst : f32 to vector<32x1xf32>
    %11 = arith.select %8, %9, %10 : vector<32x1xi1>, vector<32x1xf32>
    %cst_3 = arith.constant 0.000000e+00 : f32
    %12 = vector.broadcast %cst_3 : f32 to vector<32x1xf32>
    %13 = arith.cmpf ogt, %11, %12 : vector<32x1xf32>
    %c0_4 = arith.constant 0 : index
    %c0_5 = arith.constant 0 : index
    %14 = vector.load %arg3[%c0_4, %c0_5] : memref<32x16xf32, #tpu.memory_space<vmem>>, vector<32x16xf32>
    %c0_6 = arith.constant 0 : index
    %c0_7 = arith.constant 0 : index
    %15 = vector.load %arg6[%c0_6, %c0_7] : memref<32x16xf32, #tpu.memory_space<vmem>>, vector<32x16xf32>
    %c0_8 = arith.constant 0 : index
    %c0_9 = arith.constant 0 : index
    %16 = vector.load %arg1[%c0_8, %c0_9] : memref<32x16xf32, #tpu.memory_space<vmem>>, vector<32x16xf32>
    %17 = arith.subf %16, %14 : vector<32x16xf32>
    %18 = math.absf %17 : vector<32x16xf32>
    %cst_10 = arith.constant 0.000000e+00 : f32
    %19 = vector.shape_cast %13 : vector<32x1xi1> to vector<32x1xi1>
    %20 = vector.broadcast %19 : vector<32x1xi1> to vector<32x16xi1>
    %21 = vector.broadcast %cst_10 : f32 to vector<32x16xf32>
    %22 = arith.select %20, %18, %21 : vector<32x16xi1>, vector<32x16xf32>
    %23 = arith.addf %15, %22 : vector<32x16xf32>
    %c0_11 = arith.constant 0 : index
    %c0_12 = arith.constant 0 : index
    %24 = vector.load %arg6[%c0_11, %c0_12] : memref<32x16xf32, #tpu.memory_space<vmem>>, vector<32x16xf32>
    tpu.vector_store %arg6[%c0_11, %c0_12], %23 {strides = array<i32>} : memref<32x16xf32, #tpu.memory_space<vmem>>, vector<32x16xf32>,
    %c0_13 = arith.constant 0 : index
    %c0_14 = arith.constant 0 : index
    %25 = vector.load %arg7[%c0_13, %c0_14] : memref<32x16xf32, #tpu.memory_space<vmem>>, vector<32x16xf32>
    %c0_15 = arith.constant 0 : index
    %c0_16 = arith.constant 0 : index
    %26 = vector.load %arg2[%c0_15, %c0_16] : memref<32x16xf32, #tpu.memory_space<vmem>>, vector<32x16xf32>
    %27 = arith.subf %26, %14 : vector<32x16xf32>
    %28 = math.absf %27 : vector<32x16xf32>
    %cst_17 = arith.constant 0.000000e+00 : f32
    %29 = vector.shape_cast %13 : vector<32x1xi1> to vector<32x1xi1>
    %30 = vector.broadcast %29 : vector<32x1xi1> to vector<32x16xi1>
    %31 = vector.broadcast %cst_17 : f32 to vector<32x16xf32>
    %32 = arith.select %30, %28, %31 : vector<32x16xi1>, vector<32x16xf32>
    %33 = arith.addf %25, %32 : vector<32x16xf32>
    %c0_18 = arith.constant 0 : index
    %c0_19 = arith.constant 0 : index
    %34 = vector.load %arg7[%c0_18, %c0_19] : memref<32x16xf32, #tpu.memory_space<vmem>>, vector<32x16xf32>
    tpu.vector_store %arg7[%c0_18, %c0_19], %33 {strides = array<i32>} : memref<32x16xf32, #tpu.memory_space<vmem>>, vector<32x16xf32>,
    %c0_20 = arith.constant 0 : index
    %c0_21 = arith.constant 0 : index
    %35 = vector.load %arg8[%c0_20, %c0_21] : memref<32x1xf32, #tpu.memory_space<vmem>>, vector<32x1xf32>
    %36 = arith.addf %35, %11 : vector<32x1xf32>
    %c0_22 = arith.constant 0 : index
    %c0_23 = arith.constant 0 : index
    %37 = vector.load %arg8[%c0_22, %c0_23] : memref<32x1xf32, #tpu.memory_space<vmem>>, vector<32x1xf32>
    tpu.vector_store %arg8[%c0_22, %c0_23], %36 {strides = array<i32>} : memref<32x1xf32, #tpu.memory_space<vmem>>, vector<32x1xf32>,
    %c0_i32_24 = arith.constant 0 : i32
    %38 = arith.cmpi eq, %arg0, %c0_i32_24 : i32
    %39 = arith.extui %38 : i1 to i32
    %c0_i32_25 = arith.constant 0 : i32
    %40 = arith.cmpi ne, %39, %c0_i32_25 : i32
    scf.if %40 {
      %c0_26 = arith.constant 0 : index
      %c0_27 = arith.constant 0 : index
      %41 = vector.load %arg6[%c0_26, %c0_27] : memref<32x16xf32, #tpu.memory_space<vmem>>, vector<32x16xf32>
      %42 = vector.shape_cast %41 : vector<32x16xf32> to vector<1x32x16xf32>
      %cst_28 = arith.constant dense<0.000000e+00> : vector<1xf32>
      %43 = vector.multi_reduction <add>, %42, %cst_28 [1, 2] : vector<1x32x16xf32> to vector<1xf32>
      %44 = vector.shape_cast %43 : vector<1xf32> to vector<1x1x1xf32>
      %45 = vector.extract %44[0, 0, 0] : f32 from vector<1x1x1xf32>
      %c0_29 = arith.constant 0 : index
      %46 = memref.load %arg5[%c0_29] : memref<3xf32, #tpu.memory_space<smem>>
      memref.store %45, %arg5[%c0_29] : memref<3xf32, #tpu.memory_space<smem>>
      %c0_30 = arith.constant 0 : index
      %c0_31 = arith.constant 0 : index
      %47 = vector.load %arg7[%c0_30, %c0_31] : memref<32x16xf32, #tpu.memory_space<vmem>>, vector<32x16xf32>
      %48 = vector.shape_cast %47 : vector<32x16xf32> to vector<1x32x16xf32>
      %cst_32 = arith.constant dense<0.000000e+00> : vector<1xf32>
      %49 = vector.multi_reduction <add>, %48, %cst_32 [1, 2] : vector<1x32x16xf32> to vector<1xf32>
      %50 = vector.shape_cast %49 : vector<1xf32> to vector<1x1x1xf32>
      %51 = vector.extract %50[0, 0, 0] : f32 from vector<1x1x1xf32>
      %c1 = arith.constant 1 : index
      %52 = memref.load %arg5[%c1] : memref<3xf32, #tpu.memory_space<smem>>
      memref.store %51, %arg5[%c1] : memref<3xf32, #tpu.memory_space<smem>>
      %c0_33 = arith.constant 0 : index
      %c0_34 = arith.constant 0 : index
      %53 = vector.load %arg8[%c0_33, %c0_34] : memref<32x1xf32, #tpu.memory_space<vmem>>, vector<32x1xf32>
      %54 = vector.shape_cast %53 : vector<32x1xf32> to vector<1x32x1xf32>
      %cst_35 = arith.constant dense<0.000000e+00> : vector<1xf32>
      %55 = vector.multi_reduction <add>, %54, %cst_35 [1, 2] : vector<1x32x1xf32> to vector<1xf32>
      %56 = vector.shape_cast %55 : vector<1xf32> to vector<1x1x1xf32>
      %57 = vector.extract %56[0, 0, 0] : f32 from vector<1x1x1xf32>
      %c2 = arith.constant 2 : index
      %58 = memref.load %arg5[%c2] : memref<3xf32, #tpu.memory_space<smem>>
      memref.store %57, %arg5[%c2] : memref<3xf32, #tpu.memory_space<smem>>
    } else {
    }
    return
  }
  func.func @transform_0(%arg0: i32) -> (i32, i32) {
    %c0_i32 = arith.constant 0 : i32
    %c0_i32_0 = arith.constant 0 : i32
    return %arg0, %c0_i32 : i32, i32
  }
  func.func @transform_1(%arg0: i32) -> (i32, i32) {
    %c0_i32 = arith.constant 0 : i32
    %c0_i32_0 = arith.constant 0 : i32
    return %arg0, %c0_i32 : i32, i32
  }
  func.func @transform_2(%arg0: i32) -> (i32, i32) {
    %c0_i32 = arith.constant 0 : i32
    %c0_i32_0 = arith.constant 0 : i32
    return %arg0, %c0_i32 : i32, i32
  }
  func.func @transform_3(%arg0: i32) -> (i32, i32) {
    %c0_i32 = arith.constant 0 : i32
    %c0_i32_0 = arith.constant 0 : i32
    return %arg0, %c0_i32 : i32, i32
  }
  func.func @transform_4(%arg0: i32) -> i32 {
    %c0_i32 = arith.constant 0 : i32
    %c0_i32_0 = arith.constant 0 : i32
    return %c0_i32 : i32
  }
}

</mosaic_0001>

<bundles_post_ra>
// kernel: _comp_trans_tts_loss_impl.5
= control target key start
LH: loop header
LB: loop body
LE: loop exit
PB: predicated region body
PF: predicated region fallthrough
CT: control target
= control target key end

     0   :  { %vm16_vm0 = vcmask 64512   ;;  %v195_v0 = vmov 0.0   ;;  %s263_s0 = inlined_call_operand.vmem [shape: f32[32,8], index: 0, kind: input, shape index: {}]   ;;  %s264_s1 = inlined_call_operand.vmem [shape: f32[32,8], index: 1, kind: input, shape index: {}]   ;;  %s265_s2 = inlined_call_operand.vmem [shape: f32[2], index: 2, kind: output, shape index: {}]  }
   0x1   :  { %17 = vst.msk [vmem:[#allocation2] sm:$0xff] %vm16_vm0, %v195_v0  ;;  %18 = vst.msk [vmem:[#allocation2 + $0x8] sm:$0xff] %vm16_vm0, %v195_v0  ;;  %v56_v1 = vld [vmem:[%s264_s1] sm:$0xff]  ;;  %v57_v2 = vld [vmem:[%s264_s1 + $0x8] sm:$0xff] }
   0x2   :  { %19 = vst.msk [vmem:[#allocation2 + $0x10] sm:$0xff] %vm16_vm0, %v195_v0  ;;  %20 = vst.msk [vmem:[#allocation2 + $0x18] sm:$0xff] %vm16_vm0, %v195_v0  ;;  %v58_v3 = vld [vmem:[%s264_s1 + $0x10] sm:$0xff]  ;;  %v59_v4 = vld [vmem:[%s264_s1 + $0x18] sm:$0xff]  ;;  %v60_v5 = vmax.f32 %v56_v1, 1e-12 }
   0x3   :  { %21 = vst.msk [vmem:[#allocation3] sm:$0xff] %vm16_vm0, %v195_v0  ;;  %22 = vst.msk [vmem:[#allocation3 + $0x8] sm:$0xff] %vm16_vm0, %v195_v0  ;;  %v61_v6 = vmax.f32 %v57_v2, 1e-12  ;;  %v62_v7 = vmax.f32 %v58_v3, 1e-12 }
   0x4   :  { %23 = vst.msk [vmem:[#allocation3 + $0x10] sm:$0xff] %vm16_vm0, %v195_v0  ;;  %24 = vst.msk [vmem:[#allocation3 + $0x18] sm:$0xff] %vm16_vm0, %v195_v0  ;;  %v63_v8 = vmax.f32 %v59_v4, 1e-12  ;;  %173 = vlog2.f32 %v60_v5 }
   0x5   :  { %7 = vsyncpa [#allocation5], 0  ;;  %175 = vlog2.f32 %v61_v6  ;;  %v40_v9 = vld [vmem:[%s263_s0] sm:$0xff]  ;;  %v41_v10 = vld [vmem:[%s263_s0 + $0x8] sm:$0xff]  ;;  %s158_s26 = sshll.u32 %s265_s2, 4  ;;  %s159_s26 = int_to_ptr.vmem [resolvable:$true] %s158_s26 }
   0x6   :  { %177 = vlog2.f32 %v62_v7  ;;  %v42_v11 = vld [vmem:[%s263_s0 + $0x10] sm:$0xff]  ;;  %v43_v14 = vld [vmem:[%s263_s0 + $0x18] sm:$0xff]  ;;  %vm76_vm1 = vcmp.gt.f32.partialorder %v40_v9, 0.0  ;;  %vm77_vm2 = vcmp.gt.f32.partialorder %v41_v10, 0.0  ;;  %s181_s28 = scalar_lea.vmem %s159_s26, 16  ;;  %p186_p1 = scmp.lt.s32.totalorder %s159_s26, %s159_s26 }
   0x7   :  { %179 = vlog2.f32 %v63_v8  ;;  %vm78_vm3 = vcmp.gt.f32.partialorder %v42_v11, 0.0  ;;  %vm79_vm4 = vcmp.gt.f32.partialorder %v43_v14, 0.0  ;;  %p182_p0 = scmp.ne.s32.totalorder %s159_s26, %s181_s28  ;;  %p187_p2 = scmp.lt.s32.totalorder %s181_s28, %s181_s28 }
   0x8   :  { %v72_v24 = vld [vmem:[#allocation2] sm:$0xff]  ;;  %v73_v27 = vld [vmem:[#allocation2 + $0x8] sm:$0xff] }
   0x9   :  { %v74_v30 = vld [vmem:[#allocation2 + $0x10] sm:$0xff]  ;;  %v75_v33 = vld [vmem:[#allocation2 + $0x18] sm:$0xff]  ;;  %p188_p3 = por %p187_p2, %p186_p1 }
   0xa   :  { %v93_v12 = vld [vmem:[#allocation3] sm:$0xff]  ;;  %v94_v13 = vld [vmem:[#allocation3 + $0x8] sm:$0xff] }
   0xb   :  { %v95_v15 = vld [vmem:[#allocation3 + $0x10] sm:$0xff]  ;;  %v96_v16 = vld [vmem:[#allocation3 + $0x18] sm:$0xff]  ;;  %v97_v17 = vadd.f32 %v93_v12, %v40_v9  ;;  %v98_v18 = vadd.f32 %v94_v13, %v41_v10  ;;  %p189_p4 = pnand %p188_p3, %p182_p0 }
   0xc   :  { %v99_v19 = vadd.f32 %v95_v15, %v42_v11  ;;  %v100_v20 = vadd.f32 %v96_v16, %v43_v14 }
   0xd   :  { %101 = vst.msk [vmem:[#allocation3] sm:$0xff] %vm16_vm0, %v97_v17  ;;  %102 = vst.msk [vmem:[#allocation3 + $0x8] sm:$0xff] %vm16_vm0, %v98_v18 }
   0xe   :  { %103 = vst.msk [vmem:[#allocation3 + $0x10] sm:$0xff] %vm16_vm0, %v99_v19  ;;  %104 = vst.msk [vmem:[#allocation3 + $0x18] sm:$0xff] %vm16_vm0, %v100_v20  ;;  %v174_v21 = vpop.eup %173 }
   0xf   :  { %v176_v22 = vpop.eup %175  ;;  %v65_v23 = vmul.f32 0.6931472, %v174_v21 }
  0x10   :  { %v178_v25 = vpop.eup %177  ;;  %v67_v26 = vmul.f32 0.6931472, %v176_v22 }
  0x11   :  { %v180_v28 = vpop.eup %179  ;;  %v69_v29 = vmul.f32 0.6931472, %v178_v25  ;;  %v80_v31 = vsel %vm76_vm1, %v65_v23, 0.0 }
  0x12   :  { %v71_v32 = vmul.f32 0.6931472, %v180_v28  ;;  %v81_v34 = vsel %vm77_vm2, %v67_v26, 0.0  ;;  %v84_v35 = vadd.f32 %v80_v31, %v72_v24 }
  0x13   :  { %v82_v36 = vsel %vm78_vm3, %v69_v29, 0.0  ;;  %v85_v37 = vadd.f32 %v81_v34, %v73_v27 }
  0x14   :  { %v83_v38 = vsel %vm79_vm4, %v71_v32, 0.0  ;;  %v86_v39 = vadd.f32 %v82_v36, %v74_v30  ;;  %89 = vst.msk [vmem:[#allocation2] sm:$0xff] %vm16_vm0, %v84_v35  ;;  %v130_v41 = vld [vmem:[#allocation3] sm:$0xff]  ;;  %v131_v42 = vld [vmem:[#allocation3 + $0x8] sm:$0xff] }
  0x15   :  { %v87_v40 = vadd.f32 %v83_v38, %v75_v33  ;;  %90 = vst.msk [vmem:[#allocation2 + $0x8] sm:$0xff] %vm16_vm0, %v85_v37  ;;  %v134_v43 = vsel %vm16_vm0, %v130_v41, 0.0  ;;  %v135_v44 = vsel %vm16_vm0, %v131_v42, 0.0  ;;  %v132_v45 = vld [vmem:[#allocation3 + $0x10] sm:$0xff]  ;;  %v133_v56 = vld [vmem:[#allocation3 + $0x18] sm:$0xff] }
  0x16   :  { %91 = vst.msk [vmem:[#allocation2 + $0x10] sm:$0xff] %vm16_vm0, %v86_v39  ;;  %v136_v49 = vadd.f32 %v135_v44, %v134_v43  ;;  %v137_v52 = vsel %vm16_vm0, %v132_v45, 0.0  ;;  %v139_v60 = vsel %vm16_vm0, %v133_v56, 0.0 }
  0x17   :  { %92 = vst.msk [vmem:[#allocation2 + $0x18] sm:$0xff] %vm16_vm0, %v87_v40 }
  0x18   :  { %v138_v59 = vadd.f32 %v137_v52, %v136_v49 }
  0x1a   :  { %v140_v62 = vadd.f32 %v139_v60, %v138_v59 }
  0x1b   :  { %v108_v46 = vld [vmem:[#allocation2] sm:$0xff] }
  0x1c   :  { %v109_v47 = vld [vmem:[#allocation2 + $0x8] sm:$0xff]  ;;  %v112_v48 = vsel %vm16_vm0, %v108_v46, 0.0 }
  0x1d   :  { %v110_v50 = vld [vmem:[#allocation2 + $0x10] sm:$0xff]  ;;  %v113_v51 = vsel %vm16_vm0, %v109_v47, 0.0 }
  0x1e   :  { %v111_v53 = vld [vmem:[#allocation2 + $0x18] sm:$0xff]  ;;  %v114_v54 = vadd.f32 %v113_v51, %v112_v48  ;;  %v115_v55 = vsel %vm16_vm0, %v110_v50, 0.0 }
  0x1f   :  { %v117_v57 = vsel %vm16_vm0, %v111_v53, 0.0 }
  0x20   :  { %v116_v58 = vadd.f32 %v115_v55, %v114_v54 }
  0x22   :  { %v118_v61 = vadd.f32 %v117_v57, %v116_v58 }
  0x24   :  { %119 = vadd.xlane.f32.xlu0 %v118_v61 }
  0x28   :  { %141 = vadd.xlane.f32.xlu0 %v140_v62 }
  0xb1   :  { %v120_v63 = vpop.xlane.xlu0 %119 }
  0xb2   :  { %v121_v0 = vrot.slane %v120_v63, 4 }
  0xb4   :  { %v122_v1 = vadd.f32 %v121_v0, %v120_v63 }
  0xb5   :  { %v142_v2 = vpop.xlane.xlu0 %141 }
  0xb6   :  { %v123_v3 = vrot.slane %v122_v1, 2  ;;  %v143_v4 = vrot.slane %v142_v2, 4 }
  0xb8   :  { %v144_v5 = vadd.f32 %v143_v4, %v142_v2  ;;  %v124_v6 = vadd.f32 %v123_v3, %v122_v1 }
  0xba   :  { %v145_v7 = vrot.slane %v144_v5, 2  ;;  %v125_v8 = vrot.slane %v124_v6, 1 }
  0xbc   :  { %v146_v9 = vadd.f32 %v145_v7, %v144_v5  ;;  %v126_v10 = vadd.f32 %v125_v8, %v124_v6 }
  0xbe   :  { %167 = vpush %v126_v10  ;;  %v147_v11 = vrot.slane %v146_v9, 1 }
  0xc0   :  { %v148_v12 = vadd.f32 %v147_v11, %v146_v9 }
  0xc2   :  { %169 = vpush %v148_v12 }
  0xef   :  { %s168_s0 = spop %167 }
  0xf0   :  { %129 = sst [smem:[#allocation4]] %s168_s0 }
  0xf3   :  { %s170_s27 = spop %169 }
  0xf4   :  { %151 = sst [smem:[#allocation4 + $0x1]] %s170_s27 }
  0xf5   :  { %192 = shalt.err (!%p189_p4)
}
  0xf6   :  { %s196_s29 = smov [#allocation4]  }
  0xf7   :  { %161 = dma.smem_to_vmem %s196_s29, 16, %s159_s26, [#allocation5]  }
  0xf8   :  { %193 = dma.done.wait [#allocation5], 16  }
  0xf9   :  { %194 = vsyncadd [#allocation5], 4294967280 }
  0xfa   :  { %165 = sfence }
  0xfb   :  { %166 = vsyncpa [#allocation5], 1 }

// kernel: _comp_trans_tts_loss_impl.4
= control target key start
LH: loop header
LB: loop body
LE: loop exit
PB: predicated region body
PF: predicated region fallthrough
CT: control target
= control target key end

     0   :  { %s419_s9 = smov 0   ;;  %s421_s10 = smov 0   ;;  %s469_s0 = inlined_call_operand.vmem [shape: f32[2,16,128], index: 0, kind: input, shape index: {}]   ;;  %s470_s1 = inlined_call_operand.vmem [shape: f32[2,1,128], index: 1, kind: input, shape index: {}]   ;;  %s471_s2 = inlined_call_operand.vmem [shape: f32[2,16,128], index: 2, kind: output, shape index: {}]  }
   0x1   :  { %s423_s11 = smov 0  }
   0x2 LB: > { %s24_s12 = sadd.s32 1, %s397_s10  ;;  %p337_p0 = scmp.ge.s32.totalorder %s401_s11, 1  ;;  %s401_s11 = sphi %s423_s11, %s12_s11   ;;  %s397_s10 = sphi %s421_s10, %s473_s10   ;;  %s393_s9 = sphi %s419_s9, %s472_s9  }
   0x3   : > { %p26_p1 = scmp.ge.s32.totalorder %s24_s12, 2  ;;  %p141_p2 = scmp.lt.s32.totalorder %s401_s11, 3 }
   0x5   : > { %s475_s12 = smov (%p26_p1, %s24_s12), 0  ;;  %p142_p3 = pnand %p337_p0, %p141_p2 }
   0x6   : > { %p175_p4 = scmp.lt.s32.totalorder (!%p142_p3), %s393_s9, 1  ;;  %v202_v0 = vlaneseq (!%p142_p3)  ;;  %v403_v4 = vmov (!%p142_p3), 0  }
   0x7   : > { %145 = sbr.rel (%p142_p3) target bundleno = 346 (0x15a), region = 28 }
   0x8   : > { %v203_v1 = vshrl.u32 (!%p142_p3), %v202_v0, 7 }
   0xa   : > { %v204_v2 = vsub.s32 (!%p142_p3), 0, %v203_v1 }
   0xe   : > { %s477_s9 = smov (!%p175_p4, %s393_s9), 1 }
   0xf   : > { %s344_s13 = sshll.u32 %s477_s9, 4  ;;  %s186_s16 = scalar_lea.vmem %s470_s1, %s477_s9 }
  0x10   : > { %s182_s19 = scalar_lea.vmem %s469_s0, %s344_s13  ;;  %v199_v3 = vld [vmem:[%s186_s16] sm:$0x1]  ;;  %s195_s22 = scalar_lea.vmem %s471_s2, %s344_s13 }
  0x11   : > { %vm200_vm0 = vcmp.gt.f32.partialorder %v199_v3, 0.0  ;;  %v197_v6 = vld [vmem:[%s182_s19] sm:$0xff]  ;;  %v198_v8 = vld [vmem:[%s182_s19 + $0x8] sm:$0xff] }
  0x12   : > { %v201_v5 = vsel %vm200_vm0, 1, %v403_v4 }
  0x13   : > { %v205_v7 = vrot.slane %v201_v5, %v204_v2 }
  0x15   : > { %vm206_vm1 = vcmp.eq.s32.totalorder %v205_v7, 1 }
  0x16   : > { %v207_v9 = vsel %vm206_vm1, %v197_v6, -1e+30  ;;  %v208_v10 = vsel %vm206_vm1, %v198_v8, -1e+30 }
  0x17   : > { %209 = vmax.xlane.f32.xlu0 %v207_v9 }
  0x1b   : > { %211 = vmax.xlane.f32.xlu0 %v208_v10 }
  0xa4   : > { %v210_v11 = vpop.xlane.xlu0 %209 }
  0xa5   : > { %v213_v12 = vsub.f32 %v207_v9, %v210_v11 }
  0xa7   : > { %v215_v13 = vmul.f32 1.442695, %v213_v12 }
  0xa8   : > { %v212_v14 = vpop.xlane.xlu0 %211 }
  0xa9   : > { %371 = vpow2.f32 %v215_v13  ;;  %v214_v15 = vsub.f32 %v208_v10, %v212_v14 }
  0xab   : > { %v217_v16 = vmul.f32 1.442695, %v214_v15 }
  0xad   : > { %373 = vpow2.f32 %v217_v16 }
  0xb3   : > { %v372_v17 = vpop.eup %371 }
  0xb4   : > { %v219_v18 = vsel %vm206_vm1, %v372_v17, 0.0 }
  0xb5   : > { %221 = vadd.xlane.f32.xlu1 %v219_v18 }
  0xb7   : > { %v374_v19 = vpop.eup %373 }
  0xb8   : > { %v220_v20 = vsel %vm206_vm1, %v374_v19, 0.0 }
  0xb9   : > { %223 = vadd.xlane.f32.xlu1 %v220_v20 }
 0x142   : > { %v222_v21 = vpop.xlane.xlu1 %221 }
 0x143   : > { %375 = vlog2.f32 %v222_v21 }
 0x146   : > { %v224_v22 = vpop.xlane.xlu1 %223 }
 0x147   : > { %377 = vlog2.f32 %v224_v22 }
 0x14d   : > { %v376_v23 = vpop.eup %375 }
 0x14e   : > { %v226_v24 = vmul.f32 0.6931472, %v376_v23 }
 0x150   : > { %v229_v25 = vadd.f32 %v226_v24, %v210_v11 }
 0x151   : > { %v378_v26 = vpop.eup %377 }
 0x152   : > { %v231_v27 = vsub.f32 %v207_v9, %v229_v25  ;;  %v228_v28 = vmul.f32 0.6931472, %v378_v26 }
 0x154   : > { %v233_v29 = vsel %vm206_vm1, %v231_v27, -1e+30  ;;  %v230_v30 = vadd.f32 %v228_v28, %v212_v14 }
 0x155   : > { %235 = vst [vmem:[%s195_s22] sm:$0xff] %v233_v29 }
 0x156   : > { %v232_v31 = vsub.f32 %v208_v10, %v230_v30 }
 0x158   : > { %v234_v32 = vsel %vm206_vm1, %v232_v31, -1e+30 }
 0x159   : > { %236 = vst [vmem:[%s195_s22 + $0x8] sm:$0xff] %v234_v32 }
 0x15a PF: > { %s12_s11 = sadd.s32 1, %s401_s11   ;;  %s472_s9 = smov %s397_s10 }
 0x15b   : > { %p9_p5 = scmp.ge.s32.totalorder %s12_s11, 4   ;;  %s473_s10 = smov %s475_s12 }
 0x15d   :  { %11 = sbr.rel (!%p9_p5) target bundleno = 2 (0x2), region = 61 }

// kernel: _comp_trans_tts_loss_impl.3
= control target key start
LH: loop header
LB: loop body
LE: loop exit
PB: predicated region body
PF: predicated region fallthrough
CT: control target
= control target key end

     0   :  { %vm31_vm0 = vcmask 7168   ;;  %v266_v3 = vmov 0   ;;  %v267_v4 = vmov 0.0   ;;  %vm22_vm5 = vcmask 130048   ;;  %s381_s0 = inlined_call_operand.vmem [shape: f32[32,16], index: 0, kind: input, shape index: {}]   ;;  %s382_s1 = inlined_call_operand.vmem [shape: f32[32,16], index: 1, kind: input, shape index: {}]   ;;  %s383_s2 = inlined_call_operand.vmem [shape: f32[32,16], index: 2, kind: input, shape index: {}]   ;;  %s384_s3 = inlined_call_operand.vmem [shape: f32[32,1], index: 3, kind: input, shape index: {}]   ;;  %s385_s4 = inlined_call_operand.vmem [shape: f32[3], index: 4, kind: output, shape index: {}]  }
   0x1   :  { %v53_v0 = vld [vmem:[%s384_s3 + $0x10] sm:$0xff]  ;;  %v51_v1 = vld [vmem:[%s384_s3] sm:$0xff]  ;;  %v54_v2 = vld [vmem:[%s384_s3 + $0x18] sm:$0xff]  ;;  %251 = vset.pattern.permute.xlu1 %v266_v3  ;;  %250 = vset.pattern.permute.xlu0 %v266_v3  ;;  %34 = vst.msk [vmem:[#allocation4 + $0x10] sm:$0xff] %vm31_vm0, %v267_v4 }
   0x2   :  { %vm61_vm1 = vcmp.gt.f32.partialorder %v53_v0, 0.0  ;;  %32 = vst.msk [vmem:[#allocation4] sm:$0xff] %vm31_vm0, %v267_v4  ;;  %33 = vst.msk [vmem:[#allocation4 + $0x8] sm:$0xff] %vm31_vm0, %v267_v4  ;;  %vm59_vm2 = vcmp.gt.f32.partialorder %v51_v1, 0.0  ;;  %vm62_vm3 = vcmp.gt.f32.partialorder %v54_v2, 0.0  ;;  %v52_v5 = vld [vmem:[%s384_s3 + $0x8] sm:$0xff] }
   0x3   :  { %35 = vst.msk [vmem:[#allocation4 + $0x18] sm:$0xff] %vm31_vm0, %v267_v4  ;;  %v85_v6 = vsel %vm61_vm1, 1, %v266_v3  ;;  %v83_v7 = vsel %vm59_vm2, 1, %v266_v3  ;;  %vm60_vm4 = vcmp.gt.f32.partialorder %v52_v5, 0.0  ;;  %v86_v8 = vsel %vm62_vm3, 1, %v266_v3 }
   0x4   :  { %94 = vperm.xlu1 %251, %v85_v6   ;;  %88 = vperm.xlu0 %250, %v83_v7   ;;  %v84_v9 = vsel %vm60_vm4, 1, %v266_v3  ;;  %25 = vst.msk [vmem:[#allocation2 + $0x10] sm:$0xff] %vm22_vm5, %v267_v4  ;;  %29 = vst.msk [vmem:[#allocation3 + $0x10] sm:$0xff] %vm22_vm5, %v267_v4 }
   0x5   :  { %23 = vst.msk [vmem:[#allocation2] sm:$0xff] %vm22_vm5, %v267_v4  ;;  %24 = vst.msk [vmem:[#allocation2 + $0x8] sm:$0xff] %vm22_vm5, %v267_v4 }
   0x6   :  { %26 = vst.msk [vmem:[#allocation2 + $0x18] sm:$0xff] %vm22_vm5, %v267_v4  ;;  %27 = vst.msk [vmem:[#allocation3] sm:$0xff] %vm22_vm5, %v267_v4 }
   0x7   :  { %28 = vst.msk [vmem:[#allocation3 + $0x8] sm:$0xff] %vm22_vm5, %v267_v4  ;;  %30 = vst.msk [vmem:[#allocation3 + $0x18] sm:$0xff] %vm22_vm5, %v267_v4 }
   0x8   :  { %9 = vsyncpa [#allocation6], 0  ;;  %97 = vperm.xlu1 %251, %v86_v8   ;;  %91 = vperm.xlu0 %250, %v84_v9   ;;  %v146_v10 = vld [vmem:[#allocation4 + $0x10] sm:$0xff]  ;;  %v63_v21 = vld [vmem:[%s383_s2] sm:$0xff]  ;;  %s232_s20 = sshll.u32 %s385_s4, 4  ;;  %s233_s20 = int_to_ptr.vmem [resolvable:$true] %s232_s20 }
   0x9   :  { %v144_v11 = vld [vmem:[#allocation4] sm:$0xff]  ;;  %v150_v13 = vadd.f32 %v146_v10, %v53_v0  ;;  %v145_v16 = vld [vmem:[#allocation4 + $0x8] sm:$0xff]  ;;  %v65_v18 = vld [vmem:[%s383_s2 + $0x10] sm:$0xff]  ;;  %s252_s3 = scalar_lea.vmem %s233_s20, 16  ;;  %p257_p1 = scmp.lt.s32.totalorder %s233_s20, %s233_s20 }
   0xa   :  { %v147_v12 = vld [vmem:[#allocation4 + $0x18] sm:$0xff]  ;;  %v148_v14 = vadd.f32 %v144_v11, %v51_v1  ;;  %v149_v17 = vadd.f32 %v145_v16, %v52_v5  ;;  %v73_v19 = vld [vmem:[%s381_s0 + $0x10] sm:$0xff]  ;;  %v71_v22 = vld [vmem:[%s381_s0] sm:$0xff]  ;;  %p253_p0 = scmp.ne.s32.totalorder %s233_s20, %s252_s3  ;;  %p258_p2 = scmp.lt.s32.totalorder %s252_s3, %s252_s3 }
   0xb   :  { %v151_v15 = vadd.f32 %v147_v12, %v54_v2  ;;  %155 = vst.msk [vmem:[#allocation4 + $0x10] sm:$0xff] %vm31_vm0, %v150_v13  ;;  %v122_v20 = vld [vmem:[%s382_s1 + $0x10] sm:$0xff]  ;;  %v120_v23 = vld [vmem:[%s382_s1] sm:$0xff]  ;;  %v66_v24 = vld [vmem:[%s383_s2 + $0x18] sm:$0xff]  ;;  %v77_v26 = vsub.f32 %v73_v19, %v65_v18  ;;  %v75_v29 = vsub.f32 %v71_v22, %v63_v21 }
   0xc   :  { %153 = vst.msk [vmem:[#allocation4] sm:$0xff] %vm31_vm0, %v148_v14  ;;  %154 = vst.msk [vmem:[#allocation4 + $0x8] sm:$0xff] %vm31_vm0, %v149_v17  ;;  %v74_v25 = vld [vmem:[%s381_s0 + $0x18] sm:$0xff]  ;;  %v126_v28 = vsub.f32 %v122_v20, %v65_v18  ;;  %v124_v30 = vsub.f32 %v120_v23, %v63_v21  ;;  %v64_v31 = vld [vmem:[%s383_s2 + $0x8] sm:$0xff]  ;;  %p259_p3 = por %p258_p2, %p257_p1 }
   0xd   :  { %156 = vst.msk [vmem:[#allocation4 + $0x18] sm:$0xff] %vm31_vm0, %v151_v15  ;;  %v123_v27 = vld [vmem:[%s382_s1 + $0x18] sm:$0xff]  ;;  %v72_v32 = vld [vmem:[%s381_s0 + $0x8] sm:$0xff]  ;;  %v78_v34 = vsub.f32 %v74_v25, %v66_v24  ;;  %v81_v36 = vand.u32 2147483647, %v77_v26  ;;  %v69_v42 = vld [vmem:[#allocation2 + $0x10] sm:$0xff] }
   0xe   :  { %v121_v33 = vld [vmem:[%s382_s1 + $0x8] sm:$0xff]  ;;  %v127_v35 = vsub.f32 %v123_v27, %v66_v24  ;;  %v76_v37 = vsub.f32 %v72_v32, %v64_v31  ;;  %v130_v39 = vand.u32 2147483647, %v126_v28  ;;  %v79_v40 = vand.u32 2147483647, %v75_v29  ;;  %v118_v45 = vld [vmem:[#allocation3 + $0x10] sm:$0xff]  ;;  %p260_p4 = pnand %p259_p3, %p253_p0 }
   0xf   :  { %v125_v38 = vsub.f32 %v121_v33, %v64_v31  ;;  %v128_v41 = vand.u32 2147483647, %v124_v30  ;;  %v82_v43 = vand.u32 2147483647, %v78_v34  ;;  %v67_v47 = vld [vmem:[#allocation2] sm:$0xff]  ;;  %v70_v60 = vld [vmem:[#allocation2 + $0x18] sm:$0xff] }
  0x10   :  { %v116_v48 = vld [vmem:[#allocation3] sm:$0xff]  ;;  %v131_v49 = vand.u32 2147483647, %v127_v35  ;;  %v80_v50 = vand.u32 2147483647, %v76_v37  ;;  %v119_v62 = vld [vmem:[#allocation3 + $0x18] sm:$0xff] }
  0x11   :  { %v129_v51 = vand.u32 2147483647, %v125_v38  ;;  %v68_v0 = vld [vmem:[#allocation2 + $0x8] sm:$0xff] }
  0x12   :  { %v117_v1 = vld [vmem:[#allocation3 + $0x8] sm:$0xff]  ;;  %v206_v12 = vld [vmem:[#allocation4 + $0x10] sm:$0xff] }
  0x13   :  { %v204_v10 = vld [vmem:[#allocation4] sm:$0xff]  ;;  %v205_v11 = vld [vmem:[#allocation4 + $0x8] sm:$0xff]  ;;  %v211_v22 = vsel %vm31_vm0, %v206_v12, 0.0 }
  0x14   :  { %v208_v13 = vsel %vm31_vm0, %v204_v10, 0.0  ;;  %v209_v14 = vsel %vm31_vm0, %v205_v11, 0.0  ;;  %v207_v31 = vld [vmem:[#allocation4 + $0x18] sm:$0xff] }
  0x15   :  { %v210_v21 = vadd.f32 %v209_v14, %v208_v13 }
  0x83   :  { %v95_v44 = vpop.permute.xlu1 %94  ;;  %v89_v46 = vpop.permute.xlu0 %88 }
  0x84   :  { %vm101_vm6 = vcmp.eq.s32.totalorder %v95_v44, 1  ;;  %vm99_vm7 = vcmp.eq.s32.totalorder %v89_v46, 1 }
  0x85   :  { %v105_v52 = vsel %vm101_vm6, %v81_v36, 0.0  ;;  %v134_v53 = vsel %vm101_vm6, %v130_v39, 0.0  ;;  %v103_v54 = vsel %vm99_vm7, %v79_v40, 0.0  ;;  %v132_v55 = vsel %vm99_vm7, %v128_v41, 0.0 }
  0x86   :  { %v109_v56 = vadd.f32 %v105_v52, %v69_v42  ;;  %v138_v57 = vadd.f32 %v134_v53, %v118_v45  ;;  %v107_v58 = vadd.f32 %v103_v54, %v67_v47  ;;  %v136_v59 = vadd.f32 %v132_v55, %v116_v48 }
  0x87   :  { %v98_v61 = vpop.permute.xlu1 %97  ;;  %v92_v63 = vpop.permute.xlu0 %91  ;;  %v212_v36 = vadd.f32 %v211_v22, %v210_v21  ;;  %v213_v39 = vsel %vm31_vm0, %v207_v31, 0.0 }
  0x88   :  { %114 = vst.msk [vmem:[#allocation2 + $0x10] sm:$0xff] %vm22_vm5, %v109_v56  ;;  %142 = vst.msk [vmem:[#allocation3 + $0x10] sm:$0xff] %vm22_vm5, %v138_v57  ;;  %vm102_vm8 = vcmp.eq.s32.totalorder %v98_v61, 1  ;;  %vm100_vm9 = vcmp.eq.s32.totalorder %v92_v63, 1 }
  0x89   :  { %112 = vst.msk [vmem:[#allocation2] sm:$0xff] %vm22_vm5, %v107_v58  ;;  %140 = vst.msk [vmem:[#allocation3] sm:$0xff] %vm22_vm5, %v136_v59  ;;  %v106_v2 = vsel %vm102_vm8, %v82_v43, 0.0  ;;  %v135_v3 = vsel %vm102_vm8, %v131_v49, 0.0  ;;  %v104_v4 = vsel %vm100_vm9, %v80_v50, 0.0  ;;  %v133_v5 = vsel %vm100_vm9, %v129_v51, 0.0 }
  0x8a   :  { %v110_v6 = vadd.f32 %v106_v2, %v70_v60  ;;  %v139_v7 = vadd.f32 %v135_v3, %v119_v62  ;;  %v108_v8 = vadd.f32 %v104_v4, %v68_v0  ;;  %v137_v9 = vadd.f32 %v133_v5, %v117_v1 }
  0x8b   :  { %v214_v42 = vadd.f32 %v213_v39, %v212_v36 }
  0x8c   :  { %115 = vst.msk [vmem:[#allocation2 + $0x18] sm:$0xff] %vm22_vm5, %v110_v6  ;;  %143 = vst.msk [vmem:[#allocation3 + $0x18] sm:$0xff] %vm22_vm5, %v139_v7 }
  0x8d   :  { %113 = vst.msk [vmem:[#allocation2 + $0x8] sm:$0xff] %vm22_vm5, %v108_v8  ;;  %141 = vst.msk [vmem:[#allocation3 + $0x8] sm:$0xff] %vm22_vm5, %v137_v9 }
  0x8f   :  { %v184_v17 = vld [vmem:[#allocation3 + $0x10] sm:$0xff] }
  0x90   :  { %v182_v15 = vld [vmem:[#allocation3] sm:$0xff]  ;;  %v162_v20 = vld [vmem:[#allocation2 + $0x10] sm:$0xff]  ;;  %v189_v32 = vsel %vm22_vm5, %v184_v17, 0.0 }
  0x91   :  { %v160_v16 = vld [vmem:[#allocation2] sm:$0xff]  ;;  %v186_v23 = vsel %vm22_vm5, %v182_v15, 0.0  ;;  %v167_v33 = vsel %vm22_vm5, %v162_v20, 0.0 }
  0x92   :  { %v164_v25 = vsel %vm22_vm5, %v160_v16, 0.0 }
  0x93   :  { %v185_v27 = vld [vmem:[#allocation3 + $0x18] sm:$0xff] }
  0x94   :  { %v183_v18 = vld [vmem:[#allocation3 + $0x8] sm:$0xff]  ;;  %v163_v29 = vld [vmem:[#allocation2 + $0x18] sm:$0xff]  ;;  %v191_v37 = vsel %vm22_vm5, %v185_v27, 0.0 }
  0x95   :  { %v161_v19 = vld [vmem:[#allocation2 + $0x8] sm:$0xff]  ;;  %v187_v24 = vsel %vm22_vm5, %v183_v18, 0.0  ;;  %v169_v38 = vsel %vm22_vm5, %v163_v29, 0.0 }
  0x96   :  { %v165_v26 = vsel %vm22_vm5, %v161_v19, 0.0  ;;  %v188_v28 = vadd.f32 %v187_v24, %v186_v23 }
  0x97   :  { %v166_v30 = vadd.f32 %v165_v26, %v164_v25 }
  0x98   :  { %v190_v34 = vadd.f32 %v189_v32, %v188_v28 }
  0x99   :  { %v168_v35 = vadd.f32 %v167_v33, %v166_v30 }
  0x9a   :  { %v192_v40 = vadd.f32 %v191_v37, %v190_v34 }
  0x9b   :  { %v170_v41 = vadd.f32 %v169_v38, %v168_v35 }
  0x9c   :  { %193 = vadd.xlane.f32.xlu1 %v192_v40 }
  0x9d   :  { %171 = vadd.xlane.f32.xlu0 %v170_v41 }
  0xa1   :  { %215 = vadd.xlane.f32.xlu0 %v214_v42 }
 0x129   :  { %v194_v43 = vpop.xlane.xlu1 %193 }
 0x12a   :  { %v172_v44 = vpop.xlane.xlu0 %171  ;;  %v195_v45 = vrot.slane %v194_v43, 4 }
 0x12b   :  { %v173_v46 = vrot.slane %v172_v44, 4 }
 0x12c   :  { %v196_v47 = vadd.f32 %v195_v45, %v194_v43 }
 0x12d   :  { %v174_v48 = vadd.f32 %v173_v46, %v172_v44 }
 0x12e   :  { %v216_v49 = vpop.xlane.xlu0 %215  ;;  %v197_v50 = vrot.slane %v196_v47, 2 }
 0x12f   :  { %v175_v51 = vrot.slane %v174_v48, 2  ;;  %v217_v52 = vrot.slane %v216_v49, 4 }
 0x130   :  { %v198_v53 = vadd.f32 %v197_v50, %v196_v47 }
 0x131   :  { %v218_v54 = vadd.f32 %v217_v52, %v216_v49  ;;  %v176_v55 = vadd.f32 %v175_v51, %v174_v48 }
 0x132   :  { %v199_v58 = vrot.slane %v198_v53, 1 }
 0x133   :  { %v219_v56 = vrot.slane %v218_v54, 2  ;;  %v177_v57 = vrot.slane %v176_v55, 1 }
 0x134   :  { %v200_v61 = vadd.f32 %v199_v58, %v198_v53 }
 0x135   :  { %v220_v59 = vadd.f32 %v219_v56, %v218_v54  ;;  %v178_v60 = vadd.f32 %v177_v57, %v176_v55 }
 0x137   :  { %241 = vpush %v178_v60  ;;  %v221_v62 = vrot.slane %v220_v59, 1 }
 0x138   :  { %243 = vpush %v200_v61 }
 0x139   :  { %v222_v63 = vadd.f32 %v221_v62, %v220_v59 }
 0x13b   :  { %245 = vpush %v222_v63 }
 0x168   :  { %s242_s0 = spop %241 }
 0x169   :  { %181 = sst [smem:[#allocation5]] %s242_s0  ;;  %s244_s21 = spop %243 }
 0x16a   :  { %203 = sst [smem:[#allocation5 + $0x1]] %s244_s21 }
 0x16c   :  { %s246_s22 = spop %245 }
 0x16d   :  { %225 = sst [smem:[#allocation5 + $0x2]] %s246_s22 }
 0x16e   :  { %263 = shalt.err (!%p260_p4)
}
 0x16f   :  { %s268_s23 = smov [#allocation5]  }
 0x170   :  { %235 = dma.smem_to_vmem %s268_s23, 16, %s233_s20, [#allocation6]  }
 0x171   :  { %264 = dma.done.wait [#allocation6], 16  }
 0x172   :  { %265 = vsyncadd [#allocation6], 4294967280 }
 0x173   :  { %239 = sfence }
 0x174   :  { %240 = vsyncpa [#allocation6], 1 }

</bundles_post_ra>
